<compile_context>
chip_gen: v6e
topology: v6e:2x2x1
jax: 0.10.0
libtpu: 0.0.40
codegen_flags: <defaults>
</compile_context>

<pallas_src>
import jax
import jax.numpy as jnp
from jax.experimental import pallas as pl
from jax.experimental.pallas import tpu as pltpu

EPSILON = 1e-05
SIGMA = 1

_NEG_INV_2SIG2 = -1.0 / (2.0 * SIGMA ** 2)        # exp(-d/(2s^2)) == exp(d * this)
_OUT_SCALE = 1.0 - EPSILON                        # (se-eps)*(1-eps)+eps
_OUT_BIAS = EPSILON * EPSILON                     #   == se*(1-eps) + eps^2

_LANE = 128


def _round_up(x, m):
    return (x + m - 1) // m * m


def _rbf_fused_kernel(table_ref, xidx_ref, yidx_ref, o_ref):
    # table_ref : (D, N) full sample table (features x samples), VMEM-resident
    # xidx_ref  : (1, TP) int32 pair indices (x side)
    # yidx_ref  : (1, TP) int32 pair indices (y side)
    # o_ref     : (1, TP) float32 — lane-dense output tile
    table = table_ref[...].astype(jnp.float32)                  # (D, N)
    n = table.shape[1]
    tp = o_ref.shape[1]

    # Fused gather as a one-hot matmul on the MXU:
    #   x - y = table @ (onehot(x_idx) - onehot(y_idx))
    row = jax.lax.broadcasted_iota(jnp.int32, (n, tp), 0)        # (N, TP)
    sel = ((row == xidx_ref[...]).astype(jnp.float32)
           - (row == yidx_ref[...]).astype(jnp.float32))         # (N, TP) in {-1,0,1}
    diff = jnp.dot(table, sel, preferred_element_type=jnp.float32)   # (D, TP)

    dist = jnp.sum(diff * diff, axis=0, keepdims=True)           # (1, TP)
    se = jnp.exp(dist * _NEG_INV_2SIG2)                          # EUP slot
    o_ref[...] = (se * _OUT_SCALE + _OUT_BIAS).astype(o_ref.dtype)


def _rbf_streaming_kernel(xt_ref, yt_ref, o_ref):
    # xt_ref, yt_ref : (D, TP) pre-gathered pairs, features on sublanes,
    #                  pairs on lanes.  o_ref: (1, TP).
    diff = xt_ref[...].astype(jnp.float32) - yt_ref[...].astype(jnp.float32)
    dist = jnp.sum(diff * diff, axis=0, keepdims=True)           # (1, TP)
    se = jnp.exp(dist * _NEG_INV_2SIG2)
    o_ref[...] = (se * _OUT_SCALE + _OUT_BIAS).astype(o_ref.dtype)


def radial_basis_function_kernel(inputs, x_idx, y_idx, *, tp=512,
                                 fuse_gather=None):
    """RBF kernel values for pairs (inputs[x_idx], inputs[y_idx]).

    inputs: [N, D]; x_idx, y_idx: [P] int -> [P] float32.
    """
    inputs = jnp.asarray(inputs)
    x_idx = jnp.asarray(x_idx, dtype=jnp.int32)
    y_idx = jnp.asarray(y_idx, dtype=jnp.int32)
    n, d = inputs.shape
    p = x_idx.shape[0]

    # Lane-aligned pair tile; don't over-pad tiny problems.
    tp_eff = min(_round_up(tp, _LANE), _round_up(p, _LANE))
    p_pad = _round_up(p, tp_eff)
    pad = p_pad - p
    grid = (p_pad // tp_eff,)

    if fuse_gather is None:
        # Fuse the gather whenever the sample table comfortably fits VMEM.
        fuse_gather = n * d * 4 <= 4 * 1024 * 1024

    cparams = pltpu.CompilerParams(
        dimension_semantics=("parallel",),          # v7x: shard pairs over 2 TCs
        vmem_limit_bytes=32 * 1024 * 1024,
    )

    if fuse_gather:
        xi = jnp.pad(x_idx, (0, pad)).reshape(1, p_pad)   # padded idx -> row 0 (valid)
        yi = jnp.pad(y_idx, (0, pad)).reshape(1, p_pad)
        table_t = inputs.T.astype(jnp.float32)            # (D, N), read once
        out = pl.pallas_call(
            _rbf_fused_kernel,
            out_shape=jax.ShapeDtypeStruct((1, p_pad), jnp.float32),
            grid_spec=pltpu.PrefetchScalarGridSpec(
                num_scalar_prefetch=0,
                grid=grid,
                in_specs=[
                    pl.BlockSpec((d, n), lambda i: (0, 0)),        # table: constant block
                    pl.BlockSpec((1, tp_eff), lambda i: (0, i)),   # x indices
                    pl.BlockSpec((1, tp_eff), lambda i: (0, i)),   # y indices
                ],
                out_specs=pl.BlockSpec((1, tp_eff), lambda i: (0, i)),
            ),
            compiler_params=cparams,
        )(table_t, xi, yi)
    else:
        # TODO(synk): for tables too large for VMEM the gather stays in XLA; a
        # manual-DMA row gather (pl.ANY + make_async_copy) could fuse it too.
        xg = jnp.pad(inputs[x_idx].astype(jnp.float32), ((0, pad), (0, 0))).T  # (D, Ppad)
        yg = jnp.pad(inputs[y_idx].astype(jnp.float32), ((0, pad), (0, 0))).T
        out = pl.pallas_call(
            _rbf_streaming_kernel,
            out_shape=jax.ShapeDtypeStruct((1, p_pad), jnp.float32),
            grid_spec=pltpu.PrefetchScalarGridSpec(
                num_scalar_prefetch=0,
                grid=grid,
                in_specs=[
                    pl.BlockSpec((d, tp_eff), lambda i: (0, i)),
                    pl.BlockSpec((d, tp_eff), lambda i: (0, i)),
                ],
                out_specs=pl.BlockSpec((1, tp_eff), lambda i: (0, i)),
            ),
            compiler_params=cparams,
        )(xg, yg)

    return out.reshape(p_pad)[:p]


def _reference(inputs, x_idx, y_idx):
    x = inputs[x_idx]
    y = inputs[y_idx]
    dist = jnp.sum((x - y) ** 2, axis=1)
    se = jnp.exp(-dist / (2.0 * SIGMA ** 2))
    return (se - EPSILON) * (1.0 - EPSILON) + EPSILON


if __name__ == "__main__":
    key = jax.random.PRNGKey(0)
    k_in, k_x, k_y = jax.random.split(key, 3)

    N, D, P = 16, 32, 8                      # small shapes consistent with the forward
    inputs = jax.random.normal(k_in, (N, D), dtype=jnp.float32)
    x_idx = jax.random.randint(k_x, (P,), 0, N, dtype=jnp.int32)
    y_idx = jax.random.randint(k_y, (P,), 0, N, dtype=jnp.int32)

    ref = _reference(inputs, x_idx, y_idx)

    # Fused-gather path (default: table fits VMEM).
    out_fused = jax.block_until_ready(
        radial_basis_function_kernel(inputs, x_idx, y_idx))
    assert out_fused.shape == (P,)
    assert jnp.allclose(out_fused, ref, rtol=1e-5, atol=1e-6), (out_fused, ref)

    # Streaming fallback path (gather in XLA, transposed [D, P] layout).
    out_stream = jax.block_until_ready(
        radial_basis_function_kernel(inputs, x_idx, y_idx, fuse_gather=False))
    assert out_stream.shape == (P,)
    assert jnp.allclose(out_stream, ref, rtol=1e-5, atol=1e-6), (out_stream, ref)

    print("KERNEL_OK")
</pallas_src>

<mosaic_0001>
module attributes {stable_mosaic.version = 11 : i64} {
  func.func @_rbf_fused_kernel(%arg0: i32, %arg1: memref<32x16xf32, #tpu.memory_space<vmem>>, %arg2: memref<1x128xi32, #tpu.memory_space<vmem>>, %arg3: memref<1x128xi32, #tpu.memory_space<vmem>>, %arg4: memref<1x128xf32, #tpu.memory_space<vmem>>) attributes {dimension_semantics = [#tpu.dimension_semantics<parallel>], iteration_bounds = array<i64: 1>, scalar_prefetch = 0 : i64, scratch_operands = 0 : i64, tpu.core_type = #tpu.core_type<tc>, window_params = [{pipeline_mode = #tpu.pipeline_mode<synchronous>, transform_indices = @transform_0, window_bounds = array<i64: 32, 16>}, {transform_indices = @transform_1, window_bounds = array<i64: 1, 128>}, {transform_indices = @transform_2, window_bounds = array<i64: 1, 128>}, {transform_indices = @transform_3, window_bounds = array<i64: 1, 128>}]} {
    %c0 = arith.constant 0 : index
    %c0_0 = arith.constant 0 : index
    %0 = vector.load %arg1[%c0, %c0_0] : memref<32x16xf32, #tpu.memory_space<vmem>>, vector<32x16xf32>
    %1 = tpu.iota {dimensions = array<i32: 0>} : vector<16x128xi32>
    %c0_1 = arith.constant 0 : index
    %c0_2 = arith.constant 0 : index
    %2 = vector.load %arg2[%c0_1, %c0_2] : memref<1x128xi32, #tpu.memory_space<vmem>>, vector<1x128xi32>
    %3 = vector.broadcast %2 : vector<1x128xi32> to vector<16x128xi32>
    %4 = arith.cmpi eq, %1, %3 : vector<16x128xi32>
    %5 = arith.extui %4 : vector<16x128xi1> to vector<16x128xi32>
    %6 = arith.sitofp %5 : vector<16x128xi32> to vector<16x128xf32>
    %c0_3 = arith.constant 0 : index
    %c0_4 = arith.constant 0 : index
    %7 = vector.load %arg3[%c0_3, %c0_4] : memref<1x128xi32, #tpu.memory_space<vmem>>, vector<1x128xi32>
    %8 = vector.broadcast %7 : vector<1x128xi32> to vector<16x128xi32>
    %9 = arith.cmpi eq, %1, %8 : vector<16x128xi32>
    %10 = arith.extui %9 : vector<16x128xi1> to vector<16x128xi32>
    %11 = arith.sitofp %10 : vector<16x128xi32> to vector<16x128xf32>
    %12 = arith.subf %6, %11 : vector<16x128xf32>
    %cst = arith.constant dense<0.000000e+00> : vector<32x128xf32>
    %13 = tpu.matmul %0, %12, %cst {dimension_numbers = #tpu.dot_dimension_numbers<[1], [0], [0], [1], [0, 0, 1, 1], [], []>} : vector<32x16xf32>, vector<16x128xf32>, vector<32x128xf32> -> vector<32x128xf32>
    %14 = arith.mulf %13, %13 : vector<32x128xf32>
    %cst_5 = arith.constant dense<0.000000e+00> : vector<128xf32>
    %15 = vector.multi_reduction <add>, %14, %cst_5 [0] : vector<32x128xf32> to vector<128xf32>
    %16 = vector.shape_cast %15 : vector<128xf32> to vector<1x128xf32>
    %cst_6 = arith.constant -5.000000e-01 : f32
    %17 = vector.broadcast %cst_6 : f32 to vector<1x128xf32>
    %18 = arith.mulf %16, %17 : vector<1x128xf32>
    %19 = math.exp %18 : vector<1x128xf32>
    %cst_7 = arith.constant 0.999989986 : f32
    %20 = vector.broadcast %cst_7 : f32 to vector<1x128xf32>
    %21 = arith.mulf %19, %20 : vector<1x128xf32>
    %cst_8 = arith.constant 1.000000e-10 : f32
    %22 = vector.broadcast %cst_8 : f32 to vector<1x128xf32>
    %23 = arith.addf %21, %22 : vector<1x128xf32>
    %c0_9 = arith.constant 0 : index
    %c0_10 = arith.constant 0 : index
    %24 = vector.load %arg4[%c0_9, %c0_10] : memref<1x128xf32, #tpu.memory_space<vmem>>, vector<1x128xf32>
    tpu.vector_store %arg4[%c0_9, %c0_10], %23 {strides = array<i32>} : memref<1x128xf32, #tpu.memory_space<vmem>>, vector<1x128xf32>,
    return
  }
  func.func @transform_0(%arg0: i32) -> (i32, i32) {
    %c0_i32 = arith.constant 0 : i32
    %c0_i32_0 = arith.constant 0 : i32
    %c0_i32_1 = arith.constant 0 : i32
    return %c0_i32, %c0_i32_0 : i32, i32
  }
  func.func @transform_1(%arg0: i32) -> (i32, i32) {
    %c0_i32 = arith.constant 0 : i32
    %c0_i32_0 = arith.constant 0 : i32
    return %c0_i32, %arg0 : i32, i32
  }
  func.func @transform_2(%arg0: i32) -> (i32, i32) {
    %c0_i32 = arith.constant 0 : i32
    %c0_i32_0 = arith.constant 0 : i32
    return %c0_i32, %arg0 : i32, i32
  }
  func.func @transform_3(%arg0: i32) -> (i32, i32) {
    %c0_i32 = arith.constant 0 : i32
    %c0_i32_0 = arith.constant 0 : i32
    return %c0_i32, %arg0 : i32, i32
  }
}

</mosaic_0001>

<bundles_post_ra>
// kernel: tpu_custom_call.1
= control target key start
LH: loop header
LB: loop body
LE: loop exit
PB: predicated region body
PF: predicated region fallthrough
CT: control target
= control target key end

     0   :  { %v19_v0 = vlaneseq  ;;  %vm46_vm0 = vcmask 130048   ;;  %s280_s0 = inlined_call_operand.vmem [shape: f32[32,16], index: 0, kind: input, shape index: {}]   ;;  %s281_s1 = inlined_call_operand.vmem [shape: s32[1,128], index: 1, kind: input, shape index: {}]   ;;  %s282_s2 = inlined_call_operand.vmem [shape: s32[1,128], index: 2, kind: input, shape index: {}]   ;;  %s283_s3 = inlined_call_operand.hbm [shape: f32[1,128], index: 3, kind: output, shape index: {}]  }
   0x1   :  { %v15_v1 = vld [vmem:[%s280_s0] sm:$0xff]  ;;  %v17_v2 = vld [vmem:[%s280_s0 + $0x10] sm:$0xff] }
   0x2   :  { %v20_v3 = vshrl.u32 %v19_v0, 7  ;;  %197 = vmatprep.mubr.msk.f32.mxu0 %vm46_vm0, %v15_v1  ;;  %200 = vmatprep.mubr.msk.f32.mxu1 %vm46_vm0, %v17_v2 }
   0x3   :  { %8 = vsyncpa [#allocation3], 0  ;;  %v177_v4 = vld [vmem:[%s281_s1] ss:$0 sm:$0xff]  ;;  %v233_v7 = vmov 0.0   ;;  %v16_v14 = vld [vmem:[%s280_s0 + $0x8] sm:$0xff] }
   0x4   :  { %v180_v5 = vld [vmem:[%s282_s2] ss:$0 sm:$0xff]  ;;  %v21_v6 = vadd.s32 8, %v20_v3  ;;  %vm27_vm1 = vcmp.eq.s32.totalorder %v20_v3, %v177_v4  ;;  %v18_v15 = vld [vmem:[%s280_s0 + $0x18] sm:$0xff]  ;;  %s234_s0 = smov [#allocation2]  }
   0x5   :  { %vm38_vm2 = vcmp.eq.s32.totalorder %v20_v3, %v180_v5  ;;  %v178_v8 = vsel %vm27_vm1, 1.0, %v233_v7  ;;  %s169_s22 = sshll.u32 %s234_s0, 4  ;;  %s170_s22 = int_to_ptr.vmem [resolvable:$true] %s169_s22 }
   0x6   :  { %v181_v9 = vsel %vm38_vm2, 1.0, %v233_v7  ;;  %vm28_vm3 = vcmp.eq.s32.totalorder %v21_v6, %v177_v4  ;;  %vm39_vm4 = vcmp.eq.s32.totalorder %v21_v6, %v180_v5  ;;  %s211_s23 = scalar_lea.vmem %s170_s22, 16  ;;  %s215_s24 = scalar_lea.vmem %s170_s22, 32 }
   0x7   :  { %v179_v10 = vsel %vm28_vm3, 1.0, %v233_v7  ;;  %v182_v11 = vsel %vm39_vm4, 1.0, %v233_v7  ;;  %v44_v13 = vsub.f32 %v178_v8, %v181_v9  ;;  %p212_p0 = scmp.ne.s32.totalorder %s170_s22, %s211_s23  ;;  %p216_p1 = scmp.lt.s32.totalorder %s170_s22, %s170_s22 }
   0x8   :  { %v45_v12 = vsub.f32 %v179_v10, %v182_v11  ;;  %p217_p2 = scmp.lt.s32.totalorder %s215_s24, %s211_s23 }
   0xa   :  { %193 = vmatprep.subr.mxu0 %v45_v12  ;;  %203 = vmatprep.subr.mxu1 %v45_v12  ;;  %p218_p3 = por %p217_p2, %p216_p1 }
   0xb   :  { %194 = vmatpush3.msra.mxu0 %v45_v12  ;;  %205 = vmatpush3.msra.mxu1 %v45_v12 }
   0xc   :  { %195 = vmatprep.subr.mxu0 %v44_v13  ;;  %204 = vmatprep.subr.mxu1 %v44_v13  ;;  %p219_p4 = pnand %p218_p3, %p212_p0 }
   0xd   :  { %196 = vmatpush3.msra.mxu0 %v44_v13  ;;  %206 = vmatpush3.msra.mxu1 %v44_v13 }
   0xe   :  { %198 = vmatmul.mubr.msk.f32.vlgmr.msra.gmra.mxu0 %vm46_vm0, %v16_v14  ;;  %201 = vmatmul.mubr.msk.f32.vlgmr.msra.gmra.mxu1 %vm46_vm0, %v18_v15 }
  0xce   :  { %v199_v16 = vpop.f32.mrf.mxu0  ;;  %v202_v17 = vpop.f32.mrf.mxu1 }
  0xcf   :  { %v145_v20 = vmul.f32 %v199_v16, %v199_v16  ;;  %v147_v24 = vmul.f32 %v202_v17, %v202_v17 }
  0xd0   :  { %v125_v18 = vpop.f32.mrf.mxu0  ;;  %v135_v19 = vpop.f32.mrf.mxu1 }
  0xd1   :  { %v144_v21 = vmul.f32 %v125_v18, %v125_v18  ;;  %v146_v23 = vmul.f32 %v135_v19, %v135_v19 }
  0xd3   :  { %v148_v22 = vadd.f32 %v145_v20, %v144_v21 }
  0xd5   :  { %v149_v25 = vadd.f32 %v148_v22, %v146_v23 }
  0xd7   :  { %v150_v26 = vadd.f32 %v149_v25, %v147_v24 }
  0xd9   :  { %v151_v27 = vrot.slane %v150_v26, 4 }
  0xdb   :  { %v152_v28 = vadd.f32 %v151_v27, %v150_v26 }
  0xdd   :  { %v153_v29 = vrot.slane %v152_v28, 2 }
  0xdf   :  { %v154_v30 = vadd.f32 %v153_v29, %v152_v28 }
  0xe1   :  { %v155_v31 = vrot.slane %v154_v30, 1 }
  0xe3   :  { %v156_v32 = vadd.f32 %v155_v31, %v154_v30 }
  0xe5   :  { %v157_v33 = vmul.f32 -0.5, %v156_v32 }
  0xe7   :  { %v158_v34 = vmul.f32 1.442695, %v157_v33 }
  0xe9   :  { %209 = vpow2.f32 %v158_v34 }
  0xf6   :  { %v210_v35 = vpop.eup %209 }
  0xf7   :  { %v160_v36 = vmul.f32 0.99999, %v210_v35 }
  0xf9   :  { %v161_v37 = vadd.f32 1e-10, %v160_v36 }
  0xfb   :  { %162 = vst [vmem:[#allocation2] sm:$0x1] %v161_v37 }
  0xfc   :  { %222 = shalt.err (!%p219_p4)
}
  0xfd   :  { %172 = dma.vmem_to_hbm [thread:$0]  %s170_s22, 16, %s283_s3, [#allocation3]  }
  0xfe   :  { %231 = dma.done.wait [#allocation3], 16  }
  0xff   :  { %232 = vsyncadd [#allocation3], 4294967280 }
 0x100   :  { %176 = vsyncpa [#allocation3], 1 }

</bundles_post_ra>
